<compile_context>
chip_gen: v5e
topology: v5e:2x2
jax: 0.10.0
libtpu: 0.0.40
codegen_flags: <defaults>
</compile_context>

<pallas_src>
import functools
from collections import namedtuple

import jax
import jax.numpy as jnp
from jax.experimental import pallas as pl
from jax.experimental.pallas import tpu as pltpu

posterior_t = namedtuple("posterior", ["z", "mean", "logvar"])
prior_t = namedtuple("prior", ["z", "mean", "logvar"])


# ----------------------------------------------------------------------------
# Fused kernel
# ----------------------------------------------------------------------------
def _encode_pool(xflat_ref, w_ref, posb_ref, g_ref, be_ref, B):
    """mean_over_T( LayerNorm(x @ W + b + pos) ) on a (B*T, p) slab -> (B, d) value.

    One MXU dot per encoder; bias already folded into posb_ref host-side; pooling
    via static sublane-range reductions (runs once, before the layer loop)."""
    T = xflat_ref.shape[0] // B
    h = jnp.dot(xflat_ref[...], w_ref[...], preferred_element_type=jnp.float32)
    h = h + posb_ref[...]                                   # (B*T, d)
    mu = jnp.mean(h, axis=-1, keepdims=True)
    var = jnp.mean((h - mu) ** 2, axis=-1, keepdims=True)
    hn = (h - mu) * jax.lax.rsqrt(var + 1e-5)
    hn = hn * g_ref[...] + be_ref[...]
    rows = [jnp.mean(hn[b * T:(b + 1) * T, :], axis=0, keepdims=True) for b in range(B)]
    return jnp.concatenate(rows, axis=0)                    # (B, d)


def gld_fused_kernel(
        # inputs
        xc_ref, xt_ref,
        wc_ref, pbc_ref, gc_ref, bec_ref,
        wt_ref, pbt_ref, gt_ref, bet_ref,
        wp_ref, bp_ref,            # prior:     (nl, d+L, 2L), (nl, 1, 2L)
        wq_ref, bq_ref,            # posterior: (nl, 2d+L, 2L), (nl, 1, 2L)
        eps_ref,                   # (nl, B, 2L) = [eps_prior | eps_posterior]
        sw_ref, sb_ref,            # spline: (L, 4*F*p), (1, 4*F*p)
        # outputs
        outs_ref,                  # (nl, B, 6L) = [mean_p|logvar_p|z_p|mean_q|logvar_q|z_q]
        theta_ref,                 # (B, 4*F*p)  = [theta1 | theta2 | theta3 | theta4]
        # scratch
        actp_s, actq_s):           # (B, d+L), (B, 2d+L)
    B = actp_s.shape[0]
    d = wc_ref.shape[1]
    L = eps_ref.shape[-1] // 2
    num_layer = eps_ref.shape[0]

    # --- encoders (run once) ---
    hc = _encode_pool(xc_ref, wc_ref, pbc_ref, gc_ref, bec_ref, B)   # (B, d)
    ht = _encode_pool(xt_ref, wt_ref, pbt_ref, gt_ref, bet_ref, B)   # (B, d)

    # Activation slabs [h_C | prev_z] and [h_C | h_T | prev_z]; constant lane
    # sub-slices written once, only the prev_z slice is refreshed per layer.
    actp_s[:, 0:d] = hc
    actp_s[:, d:d + L] = jnp.zeros((B, L), jnp.float32)
    actq_s[:, 0:d] = hc
    actq_s[:, d:2 * d] = ht
    actq_s[:, 2 * d:2 * d + L] = jnp.zeros((B, L), jnp.float32)

    z_q = None
    for i in range(num_layer):                              # static unroll (num_layer tiny)
        eps_i = eps_ref[i]                                  # (B, 2L)

        # prior head: ONE matmul, [mean | logvar] fused along the output axis.
        hp = jnp.dot(actp_s[...], wp_ref[i],
                     preferred_element_type=jnp.float32) + bp_ref[i]   # (B, 2L)
        mean_p, logvar_p = hp[:, :L], hp[:, L:]
        z_p = mean_p + jnp.exp(0.5 * logvar_p) * eps_i[:, :L]

        # posterior head: ONE matmul.
        hq = jnp.dot(actq_s[...], wq_ref[i],
                     preferred_element_type=jnp.float32) + bq_ref[i]   # (B, 2L)
        mean_q, logvar_q = hq[:, :L], hq[:, L:]
        z_q = mean_q + jnp.exp(0.5 * logvar_q) * eps_i[:, L:]

        # single lane-dense (B, 6L) store per layer.
        outs_ref[i] = jnp.concatenate([hp, z_p, hq, z_q], axis=-1)

        if i + 1 < num_layer:
            # prev_w pooling is folded into the weights host-side, so carry z directly.
            actp_s[:, d:d + L] = z_p
            actq_s[:, 2 * d:2 * d + L] = z_q

    # --- spline head on the last posterior z; theta groups are contiguous lane blocks ---
    hsp = jnp.dot(z_q, sw_ref[...], preferred_element_type=jnp.float32) + sb_ref[...]
    fp = theta_ref.shape[-1] // 4                           # future * p
    t1 = hsp[:, 0:fp]                                                   # theta1: identity
    x2 = hsp[:, fp:2 * fp]
    t2 = jnp.maximum(x2, 0.0) + jnp.log1p(jnp.exp(-jnp.abs(x2)))        # theta2: softplus
    t34 = jnp.exp(hsp[:, 2 * fp:])                                      # theta3/4: exp (GLD_finite)
    theta_ref[...] = jnp.concatenate([t1, t2, t34], axis=-1)


# ----------------------------------------------------------------------------
# pallas_call wrapper (grid-less: everything is a whole-array VMEM block)
# ----------------------------------------------------------------------------
def gld_fused(params, xc_flat, xt_flat, posb_c, posb_t, eps,
              num_layer, future, d_latent):
    B = eps.shape[1]
    d = params["fc_C"]["W"].shape[1]
    L = future * d_latent
    wide = params["spline_W"].shape[1]                      # 4 * future * p

    out_shape = (
        jax.ShapeDtypeStruct((num_layer, B, 6 * L), jnp.float32),   # per-layer slab
        jax.ShapeDtypeStruct((B, wide), jnp.float32),               # theta slab
    )
    scratch = [
        pltpu.VMEM((B, d + L), jnp.float32),        # [h_C | prev_z]       (prior acts)
        pltpu.VMEM((B, 2 * d + L), jnp.float32),    # [h_C | h_T | prev_z] (posterior acts)
    ]
    return pl.pallas_call(
        gld_fused_kernel,
        out_shape=out_shape,
        scratch_shapes=scratch,
    )(xc_flat, xt_flat,
      params["fc_C"]["W"], posb_c, params["fc_C"]["gamma"], params["fc_C"]["beta"],
      params["fc_T"]["W"], posb_t, params["fc_T"]["gamma"], params["fc_T"]["beta"],
      params["prior_W"], params["prior_b"],
      params["posterior_W"], params["posterior_b"],
      eps,
      params["spline_W"], params["spline_b"])


# ----------------------------------------------------------------------------
# Parameter init + forward glue (plain JAX)
# ----------------------------------------------------------------------------
def pack_spline(Ws, bs):
    """Pack per-future Linear(d_latent -> 4p) weights into a block-diagonal matrix
    whose columns are permuted so each theta group is ONE contiguous lane block
    spanning all futures:

        new column  k*(F*p) + f*p + j   <-   (future f, old interleaved column 4*j + k)

    NOTE: any externally loaded checkpoint must be repacked identically."""
    F, dl, fourp = Ws.shape
    p = fourp // 4
    W = jnp.zeros((F * dl, 4 * F * p), jnp.float32)
    b = jnp.zeros((1, 4 * F * p), jnp.float32)
    for k in range(4):
        for f in range(F):
            for j in range(p):
                col_new = k * F * p + f * p + j
                col_old = 4 * j + k
                W = W.at[f * dl:(f + 1) * dl, col_new].set(Ws[f, :, col_old])
                b = b.at[0, col_new].set(bs[f, col_old])
    return W, b


def init_params(key, cfg):
    p, d = cfg["p"], cfg["d_model"]
    Tc, F, dl, nl = cfg["timesteps"], cfg["future"], cfg["d_latent"], cfg["num_layer"]
    L = F * dl
    keys = jax.random.split(key, 16)
    it = iter(keys)
    n = lambda shape, s=0.1: jax.random.normal(next(it), shape, jnp.float32) * s

    params = {
        "fc_C": dict(W=n((p, d)), b=n((1, d)), pos=n((Tc, d)),
                     gamma=jnp.ones((1, d), jnp.float32), beta=jnp.zeros((1, d), jnp.float32)),
        "fc_T": dict(W=n((p, d)), b=n((1, d)), pos=n((F, d)),
                     gamma=jnp.ones((1, d), jnp.float32), beta=jnp.zeros((1, d), jnp.float32)),
    }

    # Gaussian heads: [W_mean | W_logvar] fused along the output axis (2L wide).
    Wc_p = n((nl, d, 2 * L)); Ww_p = n((nl, dl, 2 * L)); b_p = n((nl, 1, 2 * L))
    Wc_q = n((nl, d, 2 * L)); Wt_q = n((nl, d, 2 * L))
    Ww_q = n((nl, dl, 2 * L)); b_q = n((nl, 1, 2 * L))

    # Fold the prev_w pooling (mean over `future` chunks of z) into the weights:
    #   prev_w @ Ww  ==  z @ (tile(Ww, future) / future)
    Wwp_p = jnp.tile(Ww_p, (1, F, 1)) / F                    # (nl, L, 2L)
    Wwp_q = jnp.tile(Ww_q, (1, F, 1)) / F
    # Stack along the contraction dim so each head is a single matmul.
    params["prior_W"] = jnp.concatenate([Wc_p, Wwp_p], axis=1)            # (nl, d+L, 2L)
    params["prior_b"] = b_p
    params["posterior_W"] = jnp.concatenate([Wc_q, Wt_q, Wwp_q], axis=1)  # (nl, 2d+L, 2L)
    params["posterior_b"] = b_q

    Ws = n((F, dl, 4 * p))      # interleaved PyTorch-style layout ...
    bs = n((F, 4 * p))
    params["spline_W"], params["spline_b"] = pack_spline(Ws, bs)   # ... repacked here
    return params


@functools.partial(jax.jit, static_argnames=("num_layer", "future", "d_latent"))
def gld_forward(params, context_batch, target_batch, noise_key,
                num_layer, future, d_latent):
    B, Tc, p = context_batch.shape
    Tf = target_batch.shape[1]
    L = future * d_latent

    # One RNG op, one eps input: [:, :, :L] prior noise, [:, :, L:] posterior noise.
    eps = jax.random.normal(noise_key, (num_layer, B, 2 * L), jnp.float32)

    # Flatten sequences and fold bias + batch-tiling into the positional slab host-side.
    xc_flat = context_batch.reshape(B * Tc, p)
    xt_flat = target_batch.reshape(B * Tf, p)
    posb_c = jnp.tile(params["fc_C"]["pos"], (B, 1)) + params["fc_C"]["b"]   # (B*Tc, d)
    posb_t = jnp.tile(params["fc_T"]["pos"], (B, 1)) + params["fc_T"]["b"]   # (B*Tf, d)

    slab, theta_slab = gld_fused(params, xc_flat, xt_flat, posb_c, posb_t, eps,
                                 num_layer, future, d_latent)

    # slab lane layout per layer: [mean_p | logvar_p | z_p | mean_q | logvar_q | z_q]
    prior_out = prior_t([slab[i, :, 2 * L:3 * L] for i in range(num_layer)],
                        [slab[i, :, 0 * L:1 * L] for i in range(num_layer)],
                        [slab[i, :, 1 * L:2 * L] for i in range(num_layer)])
    post_out = posterior_t([slab[i, :, 5 * L:6 * L] for i in range(num_layer)],
                           [slab[i, :, 3 * L:4 * L] for i in range(num_layer)],
                           [slab[i, :, 4 * L:5 * L] for i in range(num_layer)])

    # theta slab: (B, 4*F*p) with contiguous [t1 | t2 | t3 | t4] groups of width F*p.
    Fp = theta_slab.shape[-1] // 4
    pp = Fp // future
    groups = [theta_slab[:, k * Fp:(k + 1) * Fp].reshape(B, future, pp).transpose(1, 0, 2)
              for k in range(4)]
    theta1, theta2, theta3, theta4 = groups                  # each (future, B, p)
    return prior_out, post_out, (theta1, theta2, theta3, theta4)


if __name__ == "__main__":
    cfg = dict(p=4, d_model=32, timesteps=8, future=4, d_latent=8,
               num_layer=2, M=10, model="GLD_finite")

    key = jax.random.PRNGKey(0)
    kp, kc, kt, kn = jax.random.split(key, 4)
    params = init_params(kp, cfg)

    context_batch = jax.random.normal(kc, (2, cfg["timesteps"], cfg["p"]), jnp.float32)
    target_batch = jax.random.normal(kt, (2, cfg["future"], cfg["p"]), jnp.float32)

    pri, post, thetas = gld_forward(params, context_batch, target_batch, kn,
                                    num_layer=cfg["num_layer"],
                                    future=cfg["future"],
                                    d_latent=cfg["d_latent"])
    jax.block_until_ready(thetas)
    jax.block_until_ready(pri.z)
    jax.block_until_ready(post.z)

    assert thetas[0].shape == (cfg["future"], 2, cfg["p"])
    assert pri.z[0].shape == (2, cfg["future"] * cfg["d_latent"])
    assert len(post.mean) == cfg["num_layer"]
    assert bool(jnp.all(thetas[1] > 0)) and bool(jnp.all(thetas[2] > 0)) and bool(jnp.all(thetas[3] > 0))
    assert all(bool(jnp.all(jnp.isfinite(t))) for t in thetas)
    print("KERNEL_OK")
</pallas_src>

<mosaic_0001>
module attributes {stable_mosaic.version = 11 : i64} {
  func.func @gld_fused_kernel(%arg0: memref<16x4xf32, #tpu.memory_space<vmem>>, %arg1: memref<8x4xf32, #tpu.memory_space<vmem>>, %arg2: memref<4x32xf32, #tpu.memory_space<vmem>>, %arg3: memref<16x32xf32, #tpu.memory_space<vmem>>, %arg4: memref<1x32xf32, #tpu.memory_space<vmem>>, %arg5: memref<1x32xf32, #tpu.memory_space<vmem>>, %arg6: memref<4x32xf32, #tpu.memory_space<vmem>>, %arg7: memref<8x32xf32, #tpu.memory_space<vmem>>, %arg8: memref<1x32xf32, #tpu.memory_space<vmem>>, %arg9: memref<1x32xf32, #tpu.memory_space<vmem>>, %arg10: memref<2x64x64xf32, #tpu.memory_space<vmem>>, %arg11: memref<2x1x64xf32, #tpu.memory_space<vmem>>, %arg12: memref<2x96x64xf32, #tpu.memory_space<vmem>>, %arg13: memref<2x1x64xf32, #tpu.memory_space<vmem>>, %arg14: memref<2x2x64xf32, #tpu.memory_space<vmem>>, %arg15: memref<32x64xf32, #tpu.memory_space<vmem>>, %arg16: memref<1x64xf32, #tpu.memory_space<vmem>>, %arg17: memref<2x2x192xf32, #tpu.memory_space<vmem>>, %arg18: memref<2x64xf32, #tpu.memory_space<vmem>>, %arg19: memref<2x64xf32, #tpu.memory_space<vmem>>, %arg20: memref<2x96xf32, #tpu.memory_space<vmem>>) attributes {dimension_semantics = [], scalar_prefetch = 0 : i64, scratch_operands = 2 : i64, tpu.core_type = #tpu.core_type<tc>} {
    %c0 = arith.constant 0 : index
    %c0_0 = arith.constant 0 : index
    %0 = vector.load %arg0[%c0, %c0_0] : memref<16x4xf32, #tpu.memory_space<vmem>>, vector<16x4xf32>
    %c0_1 = arith.constant 0 : index
    %c0_2 = arith.constant 0 : index
    %1 = vector.load %arg2[%c0_1, %c0_2] : memref<4x32xf32, #tpu.memory_space<vmem>>, vector<4x32xf32>
    %cst = arith.constant dense<0.000000e+00> : vector<16x32xf32>
    %2 = tpu.matmul %0, %1, %cst {dimension_numbers = #tpu.dot_dimension_numbers<[1], [0], [0], [1], [0, 0, 1, 1], [], []>} : vector<16x4xf32>, vector<4x32xf32>, vector<16x32xf32> -> vector<16x32xf32>
    %c0_3 = arith.constant 0 : index
    %c0_4 = arith.constant 0 : index
    %3 = vector.load %arg3[%c0_3, %c0_4] : memref<16x32xf32, #tpu.memory_space<vmem>>, vector<16x32xf32>
    %4 = arith.addf %2, %3 : vector<16x32xf32>
    %cst_5 = arith.constant dense<0.000000e+00> : vector<16xf32>
    %5 = vector.multi_reduction <add>, %4, %cst_5 [1] : vector<16x32xf32> to vector<16xf32>
    %6 = vector.shape_cast %5 : vector<16xf32> to vector<16x1xf32>
    %cst_6 = arith.constant 3.200000e+01 : f32
    %7 = vector.broadcast %cst_6 : f32 to vector<16x1xf32>
    %8 = arith.divf %6, %7 : vector<16x1xf32>
    %9 = vector.broadcast %8 : vector<16x1xf32> to vector<16x32xf32>
    %10 = arith.subf %4, %9 : vector<16x32xf32>
    %11 = arith.mulf %10, %10 : vector<16x32xf32>
    %cst_7 = arith.constant dense<0.000000e+00> : vector<16xf32>
    %12 = vector.multi_reduction <add>, %11, %cst_7 [1] : vector<16x32xf32> to vector<16xf32>
    %13 = vector.shape_cast %12 : vector<16xf32> to vector<16x1xf32>
    %cst_8 = arith.constant 3.200000e+01 : f32
    %14 = vector.broadcast %cst_8 : f32 to vector<16x1xf32>
    %15 = arith.divf %13, %14 : vector<16x1xf32>
    %16 = vector.broadcast %8 : vector<16x1xf32> to vector<16x32xf32>
    %17 = arith.subf %4, %16 : vector<16x32xf32>
    %cst_9 = arith.constant 9.99999974E-6 : f32
    %18 = vector.broadcast %cst_9 : f32 to vector<16x1xf32>
    %19 = arith.addf %15, %18 : vector<16x1xf32>
    %20 = math.rsqrt %19 : vector<16x1xf32>
    %21 = vector.broadcast %20 : vector<16x1xf32> to vector<16x32xf32>
    %22 = arith.mulf %17, %21 : vector<16x32xf32>
    %c0_10 = arith.constant 0 : index
    %c0_11 = arith.constant 0 : index
    %23 = vector.load %arg4[%c0_10, %c0_11] : memref<1x32xf32, #tpu.memory_space<vmem>>, vector<1x32xf32>
    %24 = vector.broadcast %23 : vector<1x32xf32> to vector<16x32xf32>
    %25 = arith.mulf %22, %24 : vector<16x32xf32>
    %c0_12 = arith.constant 0 : index
    %c0_13 = arith.constant 0 : index
    %26 = vector.load %arg5[%c0_12, %c0_13] : memref<1x32xf32, #tpu.memory_space<vmem>>, vector<1x32xf32>
    %27 = vector.broadcast %26 : vector<1x32xf32> to vector<16x32xf32>
    %28 = arith.addf %25, %27 : vector<16x32xf32>
    %29 = vector.extract_strided_slice %28 {offsets = [0, 0], sizes = [8, 32], strides = [1, 1]} : vector<16x32xf32> to vector<8x32xf32>
    %cst_14 = arith.constant dense<0.000000e+00> : vector<32xf32>
    %30 = vector.multi_reduction <add>, %29, %cst_14 [0] : vector<8x32xf32> to vector<32xf32>
    %31 = vector.shape_cast %30 : vector<32xf32> to vector<1x32xf32>
    %cst_15 = arith.constant 8.000000e+00 : f32
    %32 = vector.broadcast %cst_15 : f32 to vector<1x32xf32>
    %33 = arith.divf %31, %32 : vector<1x32xf32>
    %34 = vector.extract_strided_slice %28 {offsets = [8, 0], sizes = [8, 32], strides = [1, 1]} : vector<16x32xf32> to vector<8x32xf32>
    %cst_16 = arith.constant dense<0.000000e+00> : vector<32xf32>
    %35 = vector.multi_reduction <add>, %34, %cst_16 [0] : vector<8x32xf32> to vector<32xf32>
    %36 = vector.shape_cast %35 : vector<32xf32> to vector<1x32xf32>
    %cst_17 = arith.constant 8.000000e+00 : f32
    %37 = vector.broadcast %cst_17 : f32 to vector<1x32xf32>
    %38 = arith.divf %36, %37 : vector<1x32xf32>
    %39 = tpu.concatenate %33, %38 in 0 : vector<1x32xf32>, vector<1x32xf32> -> vector<2x32xf32>
    %c0_18 = arith.constant 0 : index
    %c0_19 = arith.constant 0 : index
    %40 = vector.load %arg1[%c0_18, %c0_19] : memref<8x4xf32, #tpu.memory_space<vmem>>, vector<8x4xf32>
    %c0_20 = arith.constant 0 : index
    %c0_21 = arith.constant 0 : index
    %41 = vector.load %arg6[%c0_20, %c0_21] : memref<4x32xf32, #tpu.memory_space<vmem>>, vector<4x32xf32>
    %cst_22 = arith.constant dense<0.000000e+00> : vector<8x32xf32>
    %42 = tpu.matmul %40, %41, %cst_22 {dimension_numbers = #tpu.dot_dimension_numbers<[1], [0], [0], [1], [0, 0, 1, 1], [], []>} : vector<8x4xf32>, vector<4x32xf32>, vector<8x32xf32> -> vector<8x32xf32>
    %c0_23 = arith.constant 0 : index
    %c0_24 = arith.constant 0 : index
    %43 = vector.load %arg7[%c0_23, %c0_24] : memref<8x32xf32, #tpu.memory_space<vmem>>, vector<8x32xf32>
    %44 = arith.addf %42, %43 : vector<8x32xf32>
    %cst_25 = arith.constant dense<0.000000e+00> : vector<8xf32>
    %45 = vector.multi_reduction <add>, %44, %cst_25 [1] : vector<8x32xf32> to vector<8xf32>
    %46 = vector.shape_cast %45 : vector<8xf32> to vector<8x1xf32>
    %cst_26 = arith.constant 3.200000e+01 : f32
    %47 = vector.broadcast %cst_26 : f32 to vector<8x1xf32>
    %48 = arith.divf %46, %47 : vector<8x1xf32>
    %49 = vector.broadcast %48 : vector<8x1xf32> to vector<8x32xf32>
    %50 = arith.subf %44, %49 : vector<8x32xf32>
    %51 = arith.mulf %50, %50 : vector<8x32xf32>
    %cst_27 = arith.constant dense<0.000000e+00> : vector<8xf32>
    %52 = vector.multi_reduction <add>, %51, %cst_27 [1] : vector<8x32xf32> to vector<8xf32>
    %53 = vector.shape_cast %52 : vector<8xf32> to vector<8x1xf32>
    %cst_28 = arith.constant 3.200000e+01 : f32
    %54 = vector.broadcast %cst_28 : f32 to vector<8x1xf32>
    %55 = arith.divf %53, %54 : vector<8x1xf32>
    %56 = vector.broadcast %48 : vector<8x1xf32> to vector<8x32xf32>
    %57 = arith.subf %44, %56 : vector<8x32xf32>
    %cst_29 = arith.constant 9.99999974E-6 : f32
    %58 = vector.broadcast %cst_29 : f32 to vector<8x1xf32>
    %59 = arith.addf %55, %58 : vector<8x1xf32>
    %60 = math.rsqrt %59 : vector<8x1xf32>
    %61 = vector.broadcast %60 : vector<8x1xf32> to vector<8x32xf32>
    %62 = arith.mulf %57, %61 : vector<8x32xf32>
    %c0_30 = arith.constant 0 : index
    %c0_31 = arith.constant 0 : index
    %63 = vector.load %arg8[%c0_30, %c0_31] : memref<1x32xf32, #tpu.memory_space<vmem>>, vector<1x32xf32>
    %64 = vector.broadcast %63 : vector<1x32xf32> to vector<8x32xf32>
    %65 = arith.mulf %62, %64 : vector<8x32xf32>
    %c0_32 = arith.constant 0 : index
    %c0_33 = arith.constant 0 : index
    %66 = vector.load %arg9[%c0_32, %c0_33] : memref<1x32xf32, #tpu.memory_space<vmem>>, vector<1x32xf32>
    %67 = vector.broadcast %66 : vector<1x32xf32> to vector<8x32xf32>
    %68 = arith.addf %65, %67 : vector<8x32xf32>
    %69 = vector.extract_strided_slice %68 {offsets = [0, 0], sizes = [4, 32], strides = [1, 1]} : vector<8x32xf32> to vector<4x32xf32>
    %cst_34 = arith.constant dense<0.000000e+00> : vector<32xf32>
    %70 = vector.multi_reduction <add>, %69, %cst_34 [0] : vector<4x32xf32> to vector<32xf32>
    %71 = vector.shape_cast %70 : vector<32xf32> to vector<1x32xf32>
    %cst_35 = arith.constant 4.000000e+00 : f32
    %72 = vector.broadcast %cst_35 : f32 to vector<1x32xf32>
    %73 = arith.divf %71, %72 : vector<1x32xf32>
    %74 = vector.extract_strided_slice %68 {offsets = [4, 0], sizes = [4, 32], strides = [1, 1]} : vector<8x32xf32> to vector<4x32xf32>
    %cst_36 = arith.constant dense<0.000000e+00> : vector<32xf32>
    %75 = vector.multi_reduction <add>, %74, %cst_36 [0] : vector<4x32xf32> to vector<32xf32>
    %76 = vector.shape_cast %75 : vector<32xf32> to vector<1x32xf32>
    %cst_37 = arith.constant 4.000000e+00 : f32
    %77 = vector.broadcast %cst_37 : f32 to vector<1x32xf32>
    %78 = arith.divf %76, %77 : vector<1x32xf32>
    %79 = tpu.concatenate %73, %78 in 0 : vector<1x32xf32>, vector<1x32xf32> -> vector<2x32xf32>
    %c0_38 = arith.constant 0 : index
    %c0_39 = arith.constant 0 : index
    %80 = vector.load %arg19[%c0_38, %c0_39] : memref<2x64xf32, #tpu.memory_space<vmem>>, vector<2x32xf32>
    tpu.vector_store %arg19[%c0_38, %c0_39], %39 {strides = array<i32>} : memref<2x64xf32, #tpu.memory_space<vmem>>, vector<2x32xf32>,
    %cst_40 = arith.constant 0.000000e+00 : f32
    %81 = vector.broadcast %cst_40 : f32 to vector<2x32xf32>
    %c0_41 = arith.constant 0 : index
    %c32 = arith.constant 32 : index
    %82 = vector.load %arg19[%c0_41, %c32] : memref<2x64xf32, #tpu.memory_space<vmem>>, vector<2x32xf32>
    tpu.vector_store %arg19[%c0_41, %c32], %81 {strides = array<i32>} : memref<2x64xf32, #tpu.memory_space<vmem>>, vector<2x32xf32>,
    %c0_42 = arith.constant 0 : index
    %c0_43 = arith.constant 0 : index
    %83 = vector.load %arg20[%c0_42, %c0_43] : memref<2x96xf32, #tpu.memory_space<vmem>>, vector<2x32xf32>
    tpu.vector_store %arg20[%c0_42, %c0_43], %39 {strides = array<i32>} : memref<2x96xf32, #tpu.memory_space<vmem>>, vector<2x32xf32>,
    %c0_44 = arith.constant 0 : index
    %c32_45 = arith.constant 32 : index
    %84 = vector.load %arg20[%c0_44, %c32_45] : memref<2x96xf32, #tpu.memory_space<vmem>>, vector<2x32xf32>
    tpu.vector_store %arg20[%c0_44, %c32_45], %79 {strides = array<i32>} : memref<2x96xf32, #tpu.memory_space<vmem>>, vector<2x32xf32>,
    %cst_46 = arith.constant 0.000000e+00 : f32
    %85 = vector.broadcast %cst_46 : f32 to vector<2x32xf32>
    %c0_47 = arith.constant 0 : index
    %c64 = arith.constant 64 : index
    %86 = vector.load %arg20[%c0_47, %c64] : memref<2x96xf32, #tpu.memory_space<vmem>>, vector<2x32xf32>
    tpu.vector_store %arg20[%c0_47, %c64], %85 {strides = array<i32>} : memref<2x96xf32, #tpu.memory_space<vmem>>, vector<2x32xf32>,
    %c0_48 = arith.constant 0 : index
    %c0_49 = arith.constant 0 : index
    %c0_50 = arith.constant 0 : index
    %87 = vector.load %arg14[%c0_48, %c0_49, %c0_50] : memref<2x2x64xf32, #tpu.memory_space<vmem>>, vector<1x2x64xf32>
    %88 = vector.shape_cast %87 : vector<1x2x64xf32> to vector<2x64xf32>
    %c0_51 = arith.constant 0 : index
    %c0_52 = arith.constant 0 : index
    %89 = vector.load %arg19[%c0_51, %c0_52] : memref<2x64xf32, #tpu.memory_space<vmem>>, vector<2x64xf32>
    %c0_53 = arith.constant 0 : index
    %c0_54 = arith.constant 0 : index
    %c0_55 = arith.constant 0 : index
    %90 = vector.load %arg10[%c0_53, %c0_54, %c0_55] : memref<2x64x64xf32, #tpu.memory_space<vmem>>, vector<1x64x64xf32>
    %91 = vector.shape_cast %90 : vector<1x64x64xf32> to vector<64x64xf32>
    %cst_56 = arith.constant dense<0.000000e+00> : vector<2x64xf32>
    %92 = tpu.matmul %89, %91, %cst_56 {dimension_numbers = #tpu.dot_dimension_numbers<[1], [0], [0], [1], [0, 0, 1, 1], [], []>} : vector<2x64xf32>, vector<64x64xf32>, vector<2x64xf32> -> vector<2x64xf32>
    %c0_57 = arith.constant 0 : index
    %c0_58 = arith.constant 0 : index
    %c0_59 = arith.constant 0 : index
    %93 = vector.load %arg11[%c0_57, %c0_58, %c0_59] : memref<2x1x64xf32, #tpu.memory_space<vmem>>, vector<1x1x64xf32>
    %94 = vector.shape_cast %93 : vector<1x1x64xf32> to vector<1x64xf32>
    %95 = vector.broadcast %94 : vector<1x64xf32> to vector<2x64xf32>
    %96 = arith.addf %92, %95 : vector<2x64xf32>
    %97 = vector.extract_strided_slice %96 {offsets = [0, 0], sizes = [2, 32], strides = [1, 1]} : vector<2x64xf32> to vector<2x32xf32>
    %98 = vector.extract_strided_slice %96 {offsets = [0, 32], sizes = [2, 32], strides = [1, 1]} : vector<2x64xf32> to vector<2x32xf32>
    %cst_60 = arith.constant 5.000000e-01 : f32
    %99 = vector.broadcast %cst_60 : f32 to vector<2x32xf32>
    %100 = arith.mulf %99, %98 : vector<2x32xf32>
    %101 = math.exp %100 : vector<2x32xf32>
    %102 = vector.extract_strided_slice %88 {offsets = [0, 0], sizes = [2, 32], strides = [1, 1]} : vector<2x64xf32> to vector<2x32xf32>
    %103 = arith.mulf %101, %102 : vector<2x32xf32>
    %104 = arith.addf %97, %103 : vector<2x32xf32>
    %c0_61 = arith.constant 0 : index
    %c0_62 = arith.constant 0 : index
    %105 = vector.load %arg20[%c0_61, %c0_62] : memref<2x96xf32, #tpu.memory_space<vmem>>, vector<2x96xf32>
    %c0_63 = arith.constant 0 : index
    %c0_64 = arith.constant 0 : index
    %c0_65 = arith.constant 0 : index
    %106 = vector.load %arg12[%c0_63, %c0_64, %c0_65] : memref<2x96x64xf32, #tpu.memory_space<vmem>>, vector<1x96x64xf32>
    %107 = vector.shape_cast %106 : vector<1x96x64xf32> to vector<96x64xf32>
    %cst_66 = arith.constant dense<0.000000e+00> : vector<2x64xf32>
    %108 = tpu.matmul %105, %107, %cst_66 {dimension_numbers = #tpu.dot_dimension_numbers<[1], [0], [0], [1], [0, 0, 1, 1], [], []>} : vector<2x96xf32>, vector<96x64xf32>, vector<2x64xf32> -> vector<2x64xf32>
    %c0_67 = arith.constant 0 : index
    %c0_68 = arith.constant 0 : index
    %c0_69 = arith.constant 0 : index
    %109 = vector.load %arg13[%c0_67, %c0_68, %c0_69] : memref<2x1x64xf32, #tpu.memory_space<vmem>>, vector<1x1x64xf32>
    %110 = vector.shape_cast %109 : vector<1x1x64xf32> to vector<1x64xf32>
    %111 = vector.broadcast %110 : vector<1x64xf32> to vector<2x64xf32>
    %112 = arith.addf %108, %111 : vector<2x64xf32>
    %113 = vector.extract_strided_slice %112 {offsets = [0, 0], sizes = [2, 32], strides = [1, 1]} : vector<2x64xf32> to vector<2x32xf32>
    %114 = vector.extract_strided_slice %112 {offsets = [0, 32], sizes = [2, 32], strides = [1, 1]} : vector<2x64xf32> to vector<2x32xf32>
    %cst_70 = arith.constant 5.000000e-01 : f32
    %115 = vector.broadcast %cst_70 : f32 to vector<2x32xf32>
    %116 = arith.mulf %115, %114 : vector<2x32xf32>
    %117 = math.exp %116 : vector<2x32xf32>
    %118 = vector.extract_strided_slice %88 {offsets = [0, 32], sizes = [2, 32], strides = [1, 1]} : vector<2x64xf32> to vector<2x32xf32>
    %119 = arith.mulf %117, %118 : vector<2x32xf32>
    %120 = arith.addf %113, %119 : vector<2x32xf32>
    %121 = tpu.concatenate %96, %104, %112, %120 in 1 : vector<2x64xf32>, vector<2x32xf32>, vector<2x64xf32>, vector<2x32xf32> -> vector<2x192xf32>
    %c0_71 = arith.constant 0 : index
    %c0_72 = arith.constant 0 : index
    %c0_73 = arith.constant 0 : index
    %122 = vector.load %arg17[%c0_71, %c0_72, %c0_73] : memref<2x2x192xf32, #tpu.memory_space<vmem>>, vector<1x2x192xf32>
    %123 = vector.shape_cast %122 : vector<1x2x192xf32> to vector<2x192xf32>
    %124 = vector.shape_cast %121 : vector<2x192xf32> to vector<1x2x192xf32>
    tpu.vector_store %arg17[%c0_71, %c0_72, %c0_73], %124 {strides = array<i32>} : memref<2x2x192xf32, #tpu.memory_space<vmem>>, vector<1x2x192xf32>,
    %c0_74 = arith.constant 0 : index
    %c32_75 = arith.constant 32 : index
    %125 = vector.load %arg19[%c0_74, %c32_75] : memref<2x64xf32, #tpu.memory_space<vmem>>, vector<2x32xf32>
    tpu.vector_store %arg19[%c0_74, %c32_75], %104 {strides = array<i32>} : memref<2x64xf32, #tpu.memory_space<vmem>>, vector<2x32xf32>,
    %c0_76 = arith.constant 0 : index
    %c64_77 = arith.constant 64 : index
    %126 = vector.load %arg20[%c0_76, %c64_77] : memref<2x96xf32, #tpu.memory_space<vmem>>, vector<2x32xf32>
    tpu.vector_store %arg20[%c0_76, %c64_77], %120 {strides = array<i32>} : memref<2x96xf32, #tpu.memory_space<vmem>>, vector<2x32xf32>,
    %c1 = arith.constant 1 : index
    %c0_78 = arith.constant 0 : index
    %c0_79 = arith.constant 0 : index
    %127 = vector.load %arg14[%c1, %c0_78, %c0_79] : memref<2x2x64xf32, #tpu.memory_space<vmem>>, vector<1x2x64xf32>
    %128 = vector.shape_cast %127 : vector<1x2x64xf32> to vector<2x64xf32>
    %c0_80 = arith.constant 0 : index
    %c0_81 = arith.constant 0 : index
    %129 = vector.load %arg19[%c0_80, %c0_81] : memref<2x64xf32, #tpu.memory_space<vmem>>, vector<2x64xf32>
    %c1_82 = arith.constant 1 : index
    %c0_83 = arith.constant 0 : index
    %c0_84 = arith.constant 0 : index
    %130 = vector.load %arg10[%c1_82, %c0_83, %c0_84] : memref<2x64x64xf32, #tpu.memory_space<vmem>>, vector<1x64x64xf32>
    %131 = vector.shape_cast %130 : vector<1x64x64xf32> to vector<64x64xf32>
    %cst_85 = arith.constant dense<0.000000e+00> : vector<2x64xf32>
    %132 = tpu.matmul %129, %131, %cst_85 {dimension_numbers = #tpu.dot_dimension_numbers<[1], [0], [0], [1], [0, 0, 1, 1], [], []>} : vector<2x64xf32>, vector<64x64xf32>, vector<2x64xf32> -> vector<2x64xf32>
    %c1_86 = arith.constant 1 : index
    %c0_87 = arith.constant 0 : index
    %c0_88 = arith.constant 0 : index
    %133 = vector.load %arg11[%c1_86, %c0_87, %c0_88] : memref<2x1x64xf32, #tpu.memory_space<vmem>>, vector<1x1x64xf32>
    %134 = vector.shape_cast %133 : vector<1x1x64xf32> to vector<1x64xf32>
    %135 = vector.broadcast %134 : vector<1x64xf32> to vector<2x64xf32>
    %136 = arith.addf %132, %135 : vector<2x64xf32>
    %137 = vector.extract_strided_slice %136 {offsets = [0, 0], sizes = [2, 32], strides = [1, 1]} : vector<2x64xf32> to vector<2x32xf32>
    %138 = vector.extract_strided_slice %136 {offsets = [0, 32], sizes = [2, 32], strides = [1, 1]} : vector<2x64xf32> to vector<2x32xf32>
    %cst_89 = arith.constant 5.000000e-01 : f32
    %139 = vector.broadcast %cst_89 : f32 to vector<2x32xf32>
    %140 = arith.mulf %139, %138 : vector<2x32xf32>
    %141 = math.exp %140 : vector<2x32xf32>
    %142 = vector.extract_strided_slice %128 {offsets = [0, 0], sizes = [2, 32], strides = [1, 1]} : vector<2x64xf32> to vector<2x32xf32>
    %143 = arith.mulf %141, %142 : vector<2x32xf32>
    %144 = arith.addf %137, %143 : vector<2x32xf32>
    %c0_90 = arith.constant 0 : index
    %c0_91 = arith.constant 0 : index
    %145 = vector.load %arg20[%c0_90, %c0_91] : memref<2x96xf32, #tpu.memory_space<vmem>>, vector<2x96xf32>
    %c1_92 = arith.constant 1 : index
    %c0_93 = arith.constant 0 : index
    %c0_94 = arith.constant 0 : index
    %146 = vector.load %arg12[%c1_92, %c0_93, %c0_94] : memref<2x96x64xf32, #tpu.memory_space<vmem>>, vector<1x96x64xf32>
    %147 = vector.shape_cast %146 : vector<1x96x64xf32> to vector<96x64xf32>
    %cst_95 = arith.constant dense<0.000000e+00> : vector<2x64xf32>
    %148 = tpu.matmul %145, %147, %cst_95 {dimension_numbers = #tpu.dot_dimension_numbers<[1], [0], [0], [1], [0, 0, 1, 1], [], []>} : vector<2x96xf32>, vector<96x64xf32>, vector<2x64xf32> -> vector<2x64xf32>
    %c1_96 = arith.constant 1 : index
    %c0_97 = arith.constant 0 : index
    %c0_98 = arith.constant 0 : index
    %149 = vector.load %arg13[%c1_96, %c0_97, %c0_98] : memref<2x1x64xf32, #tpu.memory_space<vmem>>, vector<1x1x64xf32>
    %150 = vector.shape_cast %149 : vector<1x1x64xf32> to vector<1x64xf32>
    %151 = vector.broadcast %150 : vector<1x64xf32> to vector<2x64xf32>
    %152 = arith.addf %148, %151 : vector<2x64xf32>
    %153 = vector.extract_strided_slice %152 {offsets = [0, 0], sizes = [2, 32], strides = [1, 1]} : vector<2x64xf32> to vector<2x32xf32>
    %154 = vector.extract_strided_slice %152 {offsets = [0, 32], sizes = [2, 32], strides = [1, 1]} : vector<2x64xf32> to vector<2x32xf32>
    %cst_99 = arith.constant 5.000000e-01 : f32
    %155 = vector.broadcast %cst_99 : f32 to vector<2x32xf32>
    %156 = arith.mulf %155, %154 : vector<2x32xf32>
    %157 = math.exp %156 : vector<2x32xf32>
    %158 = vector.extract_strided_slice %128 {offsets = [0, 32], sizes = [2, 32], strides = [1, 1]} : vector<2x64xf32> to vector<2x32xf32>
    %159 = arith.mulf %157, %158 : vector<2x32xf32>
    %160 = arith.addf %153, %159 : vector<2x32xf32>
    %161 = tpu.concatenate %136, %144, %152, %160 in 1 : vector<2x64xf32>, vector<2x32xf32>, vector<2x64xf32>, vector<2x32xf32> -> vector<2x192xf32>
    %c1_100 = arith.constant 1 : index
    %c0_101 = arith.constant 0 : index
    %c0_102 = arith.constant 0 : index
    %162 = vector.load %arg17[%c1_100, %c0_101, %c0_102] : memref<2x2x192xf32, #tpu.memory_space<vmem>>, vector<1x2x192xf32>
    %163 = vector.shape_cast %162 : vector<1x2x192xf32> to vector<2x192xf32>
    %164 = vector.shape_cast %161 : vector<2x192xf32> to vector<1x2x192xf32>
    tpu.vector_store %arg17[%c1_100, %c0_101, %c0_102], %164 {strides = array<i32>} : memref<2x2x192xf32, #tpu.memory_space<vmem>>, vector<1x2x192xf32>,
    %c0_103 = arith.constant 0 : index
    %c0_104 = arith.constant 0 : index
    %165 = vector.load %arg15[%c0_103, %c0_104] : memref<32x64xf32, #tpu.memory_space<vmem>>, vector<32x64xf32>
    %cst_105 = arith.constant dense<0.000000e+00> : vector<2x64xf32>
    %166 = tpu.matmul %160, %165, %cst_105 {dimension_numbers = #tpu.dot_dimension_numbers<[1], [0], [0], [1], [0, 0, 1, 1], [], []>} : vector<2x32xf32>, vector<32x64xf32>, vector<2x64xf32> -> vector<2x64xf32>
    %c0_106 = arith.constant 0 : index
    %c0_107 = arith.constant 0 : index
    %167 = vector.load %arg16[%c0_106, %c0_107] : memref<1x64xf32, #tpu.memory_space<vmem>>, vector<1x64xf32>
    %168 = vector.broadcast %167 : vector<1x64xf32> to vector<2x64xf32>
    %169 = arith.addf %166, %168 : vector<2x64xf32>
    %170 = vector.extract_strided_slice %169 {offsets = [0, 0], sizes = [2, 16], strides = [1, 1]} : vector<2x64xf32> to vector<2x16xf32>
    %171 = vector.extract_strided_slice %169 {offsets = [0, 16], sizes = [2, 16], strides = [1, 1]} : vector<2x64xf32> to vector<2x16xf32>
    %cst_108 = arith.constant 0.000000e+00 : f32
    %172 = vector.broadcast %cst_108 : f32 to vector<2x16xf32>
    %173 = arith.maximumf %171, %172 : vector<2x16xf32>
    %174 = math.absf %171 : vector<2x16xf32>
    %cst_109 = arith.constant 0.000000e+00 : f32
    %175 = vector.broadcast %cst_109 : f32 to vector<2x16xf32>
    %176 = arith.subf %175, %174 : vector<2x16xf32>
    %177 = math.exp %176 : vector<2x16xf32>
    %178 = math.log1p %177 : vector<2x16xf32>
    %179 = arith.addf %173, %178 : vector<2x16xf32>
    %180 = vector.extract_strided_slice %169 {offsets = [0, 32], sizes = [2, 32], strides = [1, 1]} : vector<2x64xf32> to vector<2x32xf32>
    %181 = math.exp %180 : vector<2x32xf32>
    %182 = tpu.concatenate %170, %179, %181 in 1 : vector<2x16xf32>, vector<2x16xf32>, vector<2x32xf32> -> vector<2x64xf32>
    %c0_110 = arith.constant 0 : index
    %c0_111 = arith.constant 0 : index
    %183 = vector.load %arg18[%c0_110, %c0_111] : memref<2x64xf32, #tpu.memory_space<vmem>>, vector<2x64xf32>
    tpu.vector_store %arg18[%c0_110, %c0_111], %182 {strides = array<i32>} : memref<2x64xf32, #tpu.memory_space<vmem>>, vector<2x64xf32>,
    return
  }
}

</mosaic_0001>

<bundles_post_ra>
// kernel: gld_forward.1
= control target key start
LH: loop header
LB: loop body
LE: loop exit
PB: predicated region body
PF: predicated region fallthrough
CT: control target
= control target key end

     0   :  { %vm70_vm0 = vcmask 1043456   ;;  %vm63_vm1 = vcmask 31744   ;;  %vm97_vm2 = vcmask 261120   ;;  %v682_v17 = vmov 32.0   ;;  %s687_s23 = smov 96   ;;  %s688_s30 = smov 64   ;;  %s1069_s2 = inlined_call_operand.vmem [shape: f32[4,32], index: 2, kind: input, shape index: {}]   ;;  %s1070_s6 = inlined_call_operand.vmem [shape: f32[4,32], index: 6, kind: input, shape index: {}]   ;;  %s1071_s0 = inlined_call_operand.vmem [shape: f32[16,4], index: 0, kind: input, shape index: {}]   ;;  %s1072_s1 = inlined_call_operand.vmem [shape: f32[8,4], index: 1, kind: input, shape index: {}]   ;;  %s1073_s7 = inlined_call_operand.vmem [shape: f32[8,32], index: 7, kind: input, shape index: {}]   ;;  %s1074_s3 = inlined_call_operand.vmem [shape: f32[16,32], index: 3, kind: input, shape index: {}]   ;;  %s1075_s8 = inlined_call_operand.vmem [shape: f32[1,32], index: 8, kind: input, shape index: {}]   ;;  %s1076_s9 = inlined_call_operand.vmem [shape: f32[1,32], index: 9, kind: input, shape index: {}]   ;;  %s1077_s4 = inlined_call_operand.vmem [shape: f32[1,32], index: 4, kind: input, shape index: {}]   ;;  %s1078_s5 = inlined_call_operand.vmem [shape: f32[1,32], index: 5, kind: input, shape index: {}]   ;;  %s1079_s12 = inlined_call_operand.vmem [shape: f32[2,96,64], index: 12, kind: input, shape index: {}]   ;;  %s1080_s13 = inlined_call_operand.vmem [shape: f32[2,1,64], index: 13, kind: input, shape index: {}]   ;;  %s1081_s10 = inlined_call_operand.vmem [shape: f32[2,64,64], index: 10, kind: input, shape index: {}]   ;;  %s1082_s11 = inlined_call_operand.vmem [shape: f32[2,1,64], index: 11, kind: input, shape index: {}]   ;;  %s1083_s14 = inlined_call_operand.vmem [shape: f32[2,2,64], index: 14, kind: input, shape index: {}]   ;;  %s1084_s15 = inlined_call_operand.vmem [shape: f32[32,64], index: 15, kind: input, shape index: {}]   ;;  %s1085_s16 = inlined_call_operand.vmem [shape: f32[1,64], index: 16, kind: input, shape index: {}]   ;;  %s1086_s17 = inlined_call_operand.vmem [shape: f32[2,2,192], index: 17, kind: output, shape index: {0}]   ;;  %s1087_s18 = inlined_call_operand.vmem [shape: f32[2,64], index: 18, kind: output, shape index: {1}]  }
   0x1   :  { %1089 = sst [smem:[#allocation4_spill]] %s1069_s2  ;;  %v186_v3 = vld [vmem:[%s1072_s1] sm:$0xff]  ;;  %v62_v12 = vld [vmem:[%s1074_s3 + $0x8] sm:$0xff]  ;;  %656 = vrcp.f32 %v682_v17  ;;  %v350_v48 = vld [vmem:[%s1079_s12 + $0x58] sm:$0xff]  ;;  %v683_v52 = vmov 4.0   ;;  %vm247_vm8 = vcmask 257024  }
   0x2   :  { %1090 = sst [smem:[#allocation5_spill]] %s1070_s6  ;;  %v188_v5 = vld [vmem:[%s1073_s7] sm:$0xff]  ;;  %v349_v49 = vld [vmem:[%s1079_s12 + $0x50] sm:$0xff]  ;;  %363 = vmatpush.msra.mxu3 %v350_v48  ;;  %v348_v54 = vld [vmem:[%s1079_s12 + $0x48] sm:$0xff]  ;;  %vm184_vm15 = vcmask 1040384  }
   0x3   :  { %1091 = sst [smem:[#allocation6_spill]] %s1071_s0  ;;  %v61_v9 = vld [vmem:[%s1074_s3] sm:$0xff]  ;;  %v346_v62 = vld [vmem:[%s1079_s12 + $0x38] sm:$0xff] }
   0x4   :  { %s1092_s29 = sld [smem:[#allocation4_spill]]  ;;  %364 = vmatpush.msra.mxu3 %v349_v49  ;;  %v347_v58 = vld [vmem:[%s1079_s12 + $0x40] sm:$0xff] }
   0x5   :  { %s1093_s19 = sld [smem:[#allocation5_spill]]  ;;  %v647_v61 = vld [vmem:[%s1075_s8] ss:$0 sm:$0xff] }
   0x6   :  { %s1094_s21 = sld [smem:[#allocation6_spill]]  ;;  %365 = vmatpush.msra.mxu3 %v348_v54 }
   0x7   :  { %v657_v18 = vpop.eup %656 }
   0x8   :  { %v105_v19 = vmul.f32 32.0, %v657_v18  ;;  %vm109_vm3 = vweird.f32 %v657_v18  ;;  %366 = vmatpush.msra.mxu3 %v347_v58 }
   0xa   :  { %v60_v0 = vld [vmem:[%s1092_s29] sm:$0xf]  ;;  %v106_v20 = vsub.f32 1.0, %v105_v19  ;;  %367 = vmatpush.msra.mxu3 %v346_v62 }
   0xb   :  { %v187_v1 = vld [vmem:[%s1093_s19] sm:$0xf]  ;;  %606 = vmatpush.msk.msra.mxu0 %vm70_vm0, %v60_v0 }
   0xc   :  { %v58_v2 = vld [vmem:[%s1094_s21] sm:$0xff]  ;;  %609 = vmatpush.msk.msra.mxu1 %vm70_vm0, %v187_v1  ;;  %v59_v4 = vld [vmem:[%s1094_s21 + $0x8] sm:$0xff]  ;;  %v107_v21 = vmul.f32 %v657_v18, %v106_v20 }
   0xd   :  { %607 = vmatmul.msk.f32.vlgmr.msra.gmra.mxu0 %vm63_vm1, %v58_v2  ;;  %610 = vmatmul.msk.f32.vlgmr.msra.gmra.mxu1 %vm63_vm1, %v186_v3  ;;  %v648_v2 = vld [vmem:[%s1076_s9] ss:$0 sm:$0xff] }
   0xe   :  { %v108_v22 = vadd.f32 %v657_v18, %v107_v21  ;;  %v684_v21 = vmov 8.0  }
  0x10   :  { %v110_v23 = vsel %vm109_vm3, %v657_v18, %v108_v22  ;;  %v650_v22 = vld [vmem:[%s1078_s5] ss:$0 sm:$0xff]  ;;  %vm277_vm3 = vcmask 517376  }
  0x15   :  { %608 = vmatmul.msk.f32.gmra.mxu0 %vm63_vm1, %v59_v4  ;;  %v345_v4 = vld [vmem:[%s1079_s12 + $0x30] sm:$0xff]  ;;  %vm275_vm1 = vcmask 254976  }
  0x16   :  { %368 = vmatpush.msra.mxu3 %v345_v4 }
  0x8a   :  { %v91_v6 = vpop.f32.mrf.mxu0  ;;  %v212_v7 = vpop.f32.mrf.mxu1 }
  0x8b   :  { %v213_v8 = vadd.f32 %v212_v7, %v188_v5  ;;  %v92_v11 = vadd.f32 %v91_v6, %v61_v9 }
  0x8d   :  { %v215_v10 = vsel %vm97_vm2, %v213_v8, 0.0  ;;  %v98_v15 = vsel %vm97_vm2, %v92_v11, 0.0 }
  0x8e   :  { %216 = vadd.xlane.f32.xlu0 %v215_v10 }
  0x92   :  { %v94_v13 = vpop.f32.mrf.mxu0 }
  0x93   :  { %v95_v14 = vadd.f32 %v94_v13, %v62_v12 }
  0x95   :  { %v101_v16 = vsel %vm97_vm2, %v95_v14, 0.0 }
  0x96   :  { %102 = vadd.xlane.f32.xlu1 %v101_v16  ;;  %99 = vadd.xlane.f32.xlu0 %v98_v15 }
 0x101   :  { %v217_v24 = vpop.xlane.xlu0 %216 }
 0x102   :  { %v218_v25 = vmul.f32 %v217_v24, %v110_v23 }
 0x104   :  { %v219_v26 = vsub.f32 %v213_v8, %v218_v25  ;;  %v344_v8 = vld [vmem:[%s1079_s12 + $0x28] sm:$0xff] }
 0x105   :  { %369 = vmatpush.msra.mxu3 %v344_v8 }
 0x106   :  { %v220_v27 = vmul.f32 %v219_v26, %v219_v26 }
 0x108   :  { %v221_v28 = vsel %vm97_vm2, %v220_v27, 0.0 }
 0x109   :  { %222 = vadd.xlane.f32.xlu1 %v221_v28  ;;  %v103_v29 = vpop.xlane.xlu1 %102  ;;  %v100_v30 = vpop.xlane.xlu0 %99 }
 0x10a   :  { %v111_v31 = vmul.f32 %v110_v23, %v100_v30  ;;  %v112_v32 = vmul.f32 %v110_v23, %v103_v29 }
 0x10c   :  { %v812_v33 = vsub.f32 %v92_v11, %v111_v31  ;;  %v816_v35 = vsub.f32 %v95_v14, %v112_v32  ;;  %v649_v14 = vld [vmem:[%s1077_s4] ss:$0 sm:$0xff]  ;;  %s685_s4 = smov 32  }
 0x10e   :  { %v115_v34 = vmul.f32 %v812_v33, %v812_v33  ;;  %v116_v37 = vmul.f32 %v816_v35, %v816_v35 }
 0x110   :  { %v117_v36 = vsel %vm97_vm2, %v115_v34, 0.0  ;;  %v120_v38 = vsel %vm97_vm2, %v116_v37, 0.0 }
 0x111   :  { %118 = vadd.xlane.f32.xlu2 %v117_v36 }
 0x119   :  { %121 = vadd.xlane.f32.xlu2 %v120_v38 }
 0x17c   :  { %v223_v39 = vpop.xlane.xlu1 %222 }
 0x17d   :  { %v224_v40 = vmul.f32 %v223_v39, %v110_v23 }
 0x17f   :  { %v225_v41 = vadd.f32 1e-05, %v224_v40 }
 0x181   :  { %658 = vrsqrt.f32 %v225_v41  ;;  %vm232_vm5 = vweird.f32 %v225_v41 }
 0x184   :  { %v119_v42 = vpop.xlane.xlu2 %118 }
 0x185   :  { %v123_v43 = vmul.f32 %v119_v42, %v110_v23 }
 0x187   :  { %v659_v44 = vpop.eup %658  ;;  %v125_v45 = vadd.f32 1e-05, %v123_v43 }
 0x188   :  { %v227_v46 = vmul.f32 %v659_v44, %v225_v41  ;;  %vm233_vm4 = vweird.f32 %v659_v44 }
 0x189   :  { %660 = vrsqrt.f32 %v125_v45  ;;  %vm234_vm6 = vmor %vm232_vm5, %vm233_vm4  ;;  %vm133_vm9 = vweird.f32 %v125_v45  ;;  %vm301_vm4 = vcmask 523264   ;;  %vm285_vm5 = vcmask 779776  }
 0x18a   :  { %v228_v47 = vmul.f32 %v659_v44, %v227_v46  ;;  %662 = vrcp.f32 %v683_v52 }
 0x18c   :  { %v229_v50 = vmul.f32 0.5, %v228_v47  ;;  %v122_v51 = vpop.xlane.xlu2 %121 }
 0x18d   :  { %v124_v53 = vmul.f32 %v122_v51, %v110_v23 }
 0x18e   :  { %v230_v55 = vsub.f32 1.5, %v229_v50 }
 0x18f   :  { %v661_v56 = vpop.eup %660  ;;  %v126_v57 = vadd.f32 1e-05, %v124_v53 }
 0x190   :  { %v231_v59 = vmul.f32 %v659_v44, %v230_v55  ;;  %v128_v60 = vmul.f32 %v661_v56, %v125_v45  ;;  %v840_v63 = vpop.eup %662  ;;  %vm134_vm7 = vweird.f32 %v661_v56 }
 0x191   :  { %664 = vrsqrt.f32 %v126_v57  ;;  %v256_v7 = vmul.f32 4.0, %v840_v63  ;;  %vm135_vm10 = vmor %vm133_vm9, %vm134_vm7  ;;  %vm143_vm12 = vweird.f32 %v126_v57  ;;  %vm260_vm14 = vweird.f32 %v840_v63 }
 0x192   :  { %v235_v0 = vsel %vm234_vm6, %v659_v44, %v231_v59  ;;  %v129_v1 = vmul.f32 %v661_v56, %v128_v60  ;;  %666 = vrcp.f32 %v684_v21  ;;  %v291_v21 = vld [vmem:[%s1081_s10 + $0x10] sm:$0xff]  ;;  %vm355_vm6 = vcmask 785408  }
 0x193   :  { %v236_v3 = vmul.f32 %v235_v0, %v219_v26  ;;  %v257_v16 = vsub.f32 1.0, %v256_v7  ;;  %vm406_vm7 = vcmask 1041408  }
 0x194   :  { %v130_v5 = vmul.f32 0.5, %v129_v1 }
 0x195   :  { %v241_v6 = vmul.f32 %v647_v61, %v236_v3  ;;  %v258_v29 = vmul.f32 %v840_v63, %v257_v16  ;;  %v296_v16 = vld [vmem:[%s1081_s10 + $0x38] sm:$0xff] }
 0x196   :  { %v131_v9 = vsub.f32 1.5, %v130_v5  ;;  %313 = vmatpush.msra.mxu2 %v296_v16  ;;  %v548_v16 = vld [vmem:[%s1084_s15 + $0x10] sm:$0xff] }
 0x197   :  { %v665_v10 = vpop.eup %664  ;;  %v246_v11 = vadd.f32 %v648_v2, %v241_v6  ;;  %v259_v40 = vadd.f32 %v840_v63, %v258_v29 }
 0x198   :  { %v132_v12 = vmul.f32 %v661_v56, %v131_v9  ;;  %v138_v13 = vmul.f32 %v665_v10, %v126_v57  ;;  %vm144_vm11 = vweird.f32 %v665_v10  ;;  %v667_v36 = vpop.eup %666 }
 0x199   :  { %v248_v15 = vsel %vm247_vm8, %v246_v11, 0.0  ;;  %v264_v17 = vrot.slane %v246_v11, 4  ;;  %vm145_vm13 = vmor %vm143_vm12, %vm144_vm11  ;;  %v169_v46 = vmul.f32 8.0, %v667_v36  ;;  %v261_v51 = vsel %vm260_vm14, %v840_v63, %v259_v40  ;;  %v343_v11 = vld [vmem:[%s1079_s12 + $0x20] sm:$0xff] }
 0x19a   :  { %v136_v18 = vsel %vm135_vm10, %v661_v56, %v132_v12  ;;  %v139_v19 = vmul.f32 %v665_v10, %v138_v13  ;;  %v249_v20 = vrot.slane %v248_v15, 4  ;;  %vm173_vm0 = vweird.f32 %v667_v36  ;;  %v342_v12 = vld [vmem:[%s1079_s12 + $0x18] sm:$0xff]  ;;  %370 = vmatpush.msra.mxu3 %v343_v11  ;;  %v341_v13 = vld [vmem:[%s1079_s12 + $0x10] sm:$0xff] }
 0x19b   :  { %v147_v23 = vmul.f32 %v136_v18, %v812_v33  ;;  %v266_v24 = vsel %vm247_vm8, %v264_v17, 0.0  ;;  %v170_v55 = vsub.f32 1.0, %v169_v46  ;;  %v295_v17 = vld [vmem:[%s1081_s10 + $0x30] sm:$0xff]  ;;  %v294_v18 = vld [vmem:[%s1081_s10 + $0x28] sm:$0xff]  ;;  %vm409_vm8 = vcmask 519170  }
 0x19c   :  { %v140_v25 = vmul.f32 0.5, %v139_v19  ;;  %v250_v26 = vadd.f32 %v249_v20, %v248_v15  ;;  %v267_v27 = vrot.slane %v266_v24, 4  ;;  %371 = vmatpush.msra.mxu3 %v342_v12  ;;  %v339_v15 = vld [vmem:[%s1079_s12] sm:$0xff]  ;;  %314 = vmatpush.msra.mxu2 %v295_v17  ;;  %v292_v20 = vld [vmem:[%s1081_s10 + $0x18] sm:$0xff]  ;;  %v547_v17 = vld [vmem:[%s1084_s15 + $0x8] sm:$0xff]  ;;  %vm593_vm11 = vcmask 130048  }
 0x19d   :  { %v153_v28 = vmul.f32 %v649_v14, %v147_v23  ;;  %v171_v61 = vmul.f32 %v667_v36, %v170_v55  ;;  %v293_v19 = vld [vmem:[%s1081_s10 + $0x20] sm:$0xff]  ;;  %v627_v55 = vld [vmem:[%s1079_s12 + $0x78] sm:$0xff]  ;;  %vm1037_vm9 = vmor %vm409_vm8, %vm406_vm7  ;;  %vm596_vm12 = vcmask 517120  }
 0x19e   :  { %v141_v30 = vsub.f32 1.5, %v140_v25  ;;  %v251_v31 = vrot.slane %v250_v26, 2  ;;  %v268_v32 = vadd.f32 %v267_v27, %v266_v24  ;;  %372 = vmatpush.msra.mxu3 %v341_v13  ;;  %315 = vmatpush.msra.mxu2 %v294_v18  ;;  %v289_v23 = vld [vmem:[%s1081_s10] sm:$0xff] }
 0x19f   :  { %v159_v34 = vadd.f32 %v650_v22, %v153_v28  ;;  %v172_v1 = vadd.f32 %v667_v36, %v171_v61  ;;  %v287_v27 = vld [vmem:[%s1083_s14] sm:$0x3] }
 0x1a0   :  { %v142_v37 = vmul.f32 %v665_v10, %v141_v30  ;;  %v252_v38 = vadd.f32 %v251_v31, %v250_v26  ;;  %v269_v39 = vrot.slane %v268_v32, 2  ;;  %316 = vmatpush.msra.mxu2 %v293_v19  ;;  %v651_v28 = vld [vmem:[%s1080_s13] ss:$0 sm:$0xff] }
 0x1a1   :  { %v161_v33 = vsel %vm97_vm2, %v159_v34, 0.0  ;;  %v174_v5 = vsel %vm173_vm0, %v667_v36, %v172_v1  ;;  %v618_v1 = vld [vmem:[%s1081_s10 + $0x60] sm:$0xff] }
 0x1a2   :  { %v162_v41 = vrot.slane %v161_v33, 4  ;;  %v146_v42 = vsel %vm145_vm13, %v665_v10, %v142_v37  ;;  %v253_v43 = vrot.slane %v252_v38, 1  ;;  %v270_v44 = vadd.f32 %v269_v39, %v268_v32  ;;  %317 = vmatpush.msra.mxu2 %v292_v20  ;;  %v652_v37 = vld [vmem:[%s1082_s11] ss:$0 sm:$0xff]  ;;  %v654_v20 = vld [vmem:[%s1082_s11 + $0x1] ss:$0 sm:$0xff] }
 0x1a3   :  { %v148_v45 = vmul.f32 %v146_v42, %v816_v35  ;;  %v686_v10 = vmov 0.0   ;;  %v634_v42 = vld [vmem:[%s1079_s12 + $0xb0] sm:$0xff]  ;;  %v546_v18 = vld [vmem:[%s1084_s15] sm:$0xff] }
 0x1a4   :  { %v254_v47 = vadd.f32 %v253_v43, %v252_v38  ;;  %v271_v48 = vrot.slane %v270_v44, 1  ;;  %v163_v49 = vadd.f32 %v162_v41, %v161_v33  ;;  %318 = vmatpush.msra.mxu2 %v291_v21  ;;  %v635_v41 = vld [vmem:[%s1079_s12 + $0xb8] sm:$0xff]  ;;  %v633_v43 = vld [vmem:[%s1079_s12 + $0xa8] sm:$0xff] }
 0x1a5   :  { %v154_v50 = vmul.f32 %v649_v14, %v148_v45  ;;  %v340_v14 = vld [vmem:[%s1079_s12 + $0x8] sm:$0xff]  ;;  %499 = vmatpush.msrb.mxu1 %v635_v41  ;;  %v655_v41 = vld [vmem:[%s1085_s16] ss:$0 sm:$0xff] }
 0x1a6   :  { %v272_v52 = vadd.f32 %v271_v48, %v270_v44  ;;  %v164_v53 = vrot.slane %v163_v49, 2  ;;  %v262_v56 = vmul.f32 %v261_v51, %v254_v47  ;;  %373 = vmatpush.msra.mxu3 %v340_v14  ;;  %v632_v44 = vld [vmem:[%s1079_s12 + $0xa0] sm:$0xff]  ;;  %v631_v47 = vld [vmem:[%s1079_s12 + $0x98] sm:$0xff]  ;;  %v630_v48 = vld [vmem:[%s1079_s12 + $0x90] sm:$0xff] }
 0x1a7   :  { %v160_v54 = vadd.f32 %v650_v22, %v154_v50  ;;  %v290_v22 = vld [vmem:[%s1081_s10 + $0x8] sm:$0xff]  ;;  %500 = vmatpush.msrb.mxu1 %v634_v42 }
 0x1a8   :  { %v273_v57 = vmul.f32 %v272_v52, %v261_v51  ;;  %v165_v35 = vadd.f32 %v164_v53, %v163_v49  ;;  %374 = vmatpush.msra.mxu3 %v339_v15  ;;  %319 = vmatpush.msra.mxu2 %v290_v22  ;;  %v629_v51 = vld [vmem:[%s1079_s12 + $0x88] sm:$0xff]  ;;  %v628_v53 = vld [vmem:[%s1079_s12 + $0x80] sm:$0xff]  ;;  %v549_v15 = vld [vmem:[%s1084_s15 + $0x18] sm:$0xff] }
 0x1a9   :  { %v176_v58 = vsel %vm97_vm2, %v160_v54, 0.0  ;;  %501 = vmatpush.msrb.mxu1 %v633_v43  ;;  %v613_v54 = vld [vmem:[%s1083_s14 + $0x2] sm:$0x3] }
 0x1aa   :  { %v177_v59 = vrot.slane %v176_v58, 4  ;;  %v274_v60 = vsel %vm184_vm15, %v262_v56, %v273_v57  ;;  %v166_v0 = vrot.slane %v165_v35, 1  ;;  %320 = vmatpush.msra.mxu2 %v289_v23  ;;  %v626_v56 = vld [vmem:[%s1079_s12 + $0x70] sm:$0xff]  ;;  %v625_v57 = vld [vmem:[%s1079_s12 + $0x68] sm:$0xff] }
 0x1ab   :  { %281 = vrot.lane.b32.xlu0 %v274_v60, %s685_s4  ;;  %502 = vmatpush.msrb.mxu1 %v632_v44 }
 0x1ac   :  { %v178_v62 = vadd.f32 %v177_v59, %v176_v58  ;;  %v167_v3 = vadd.f32 %v166_v0, %v165_v35  ;;  %v624_v58 = vld [vmem:[%s1079_s12 + $0x60] sm:$0xff]  ;;  %v620_v0 = vld [vmem:[%s1081_s10 + $0x70] sm:$0xff]  ;;  %568 = vmatpush.msrb.mxu2 %v549_v15 }
 0x1ad   :  { %503 = vmatpush.msrb.mxu1 %v631_v47 }
 0x1ae   :  { %v179_v63 = vrot.slane %v178_v62, 2  ;;  %v175_v7 = vmul.f32 %v174_v5, %v167_v3  ;;  %v616_v3 = vld [vmem:[%s1081_s10 + $0x50] sm:$0xff]  ;;  %569 = vmatpush.msrb.mxu2 %v548_v16 }
 0x1af   :  { %504 = vmatpush.msrb.mxu1 %v630_v48 }
 0x1b0   :  { %v180_v2 = vadd.f32 %v179_v63, %v178_v62  ;;  %v621_v62 = vld [vmem:[%s1081_s10 + $0x78] sm:$0xff]  ;;  %v619_v63 = vld [vmem:[%s1081_s10 + $0x68] sm:$0xff]  ;;  %570 = vmatpush.msrb.mxu2 %v547_v17 }
 0x1b1   :  { %505 = vmatpush.msrb.mxu1 %v629_v51  ;;  %448 = vmatpush.msrb.mxu0 %v621_v62 }
 0x1b2   :  { %v181_v4 = vrot.slane %v180_v2, 1  ;;  %571 = vmatpush.msrb.mxu2 %v546_v18 }
 0x1b3   :  { %329 = vrot.lane.b32.xlu0 %v287_v27, %s685_s4  ;;  %506 = vmatpush.msrb.mxu1 %v628_v53 }
 0x1b4   :  { %v182_v6 = vadd.f32 %v181_v4, %v180_v2  ;;  %449 = vmatpush.msrb.mxu0 %v620_v0  ;;  %v617_v2 = vld [vmem:[%s1081_s10 + $0x58] sm:$0xff]  ;;  %v615_v4 = vld [vmem:[%s1081_s10 + $0x48] sm:$0xff] }
 0x1b5   :  { %507 = vmatpush.msrb.mxu1 %v627_v55 }
 0x1b6   :  { %v183_v8 = vmul.f32 %v182_v6, %v174_v5  ;;  %450 = vmatpush.msrb.mxu0 %v619_v63  ;;  %v614_v5 = vld [vmem:[%s1081_s10 + $0x40] sm:$0xff] }
 0x1b7   :  { %508 = vmatpush.msrb.mxu1 %v626_v56 }
 0x1b8   :  { %v185_v9 = vsel %vm184_vm15, %v175_v7, %v183_v8  ;;  %451 = vmatpush.msrb.mxu0 %v618_v1  ;;  %v653_v7 = vld [vmem:[%s1080_s13 + $0x1] ss:$0 sm:$0xff] }
 0x1b9   :  { %276 = vst.msk [vmem:[#allocation2] sm:$0x3] %vm275_vm1, %v185_v9  ;;  %509 = vmatpush.msrb.mxu1 %v625_v57 }
 0x1ba   :  { %278 = vst.msk [vmem:[#allocation2] sm:$0x3] %vm277_vm3, %v686_v10  ;;  %452 = vmatpush.msrb.mxu0 %v617_v2 }
 0x1bb   :  { %279 = vst.msk [vmem:[#allocation3] sm:$0x3] %vm275_vm1, %v185_v9  ;;  %510 = vmatpush.msrb.mxu1 %v624_v58 }
 0x1bc   :  { %453 = vmatpush.msrb.mxu0 %v616_v3 }
 0x1be   :  { %454 = vmatpush.msrb.mxu0 %v615_v4 }
 0x1c0   :  { %455 = vmatpush.msrb.mxu0 %v614_v5 }
 0x1c1   :  { %v288_v24 = vld [vmem:[#allocation2] sm:$0x3] }
 0x1c2   :  { %611 = vmatmul.msk.f32.vlgmr.msra.gmra.mxu2 %vm301_vm4, %v288_v24 }
 0x21d   :  { %v282_v25 = vpop.permute.xlu0 %281 }
 0x21e   :  { %284 = vst.msk [vmem:[#allocation3] sm:$0x3] %vm277_vm3, %v282_v25 }
 0x21f   :  { %286 = vst.msk [vmem:[#allocation3] sm:$0x3] %vm285_vm5, %v686_v10 }
 0x225   :  { %v330_v50 = vpop.permute.xlu0 %329 }
 0x226   :  { %v338_v26 = vld [vmem:[#allocation3] sm:$0x3] }
 0x227   :  { %612 = vmatmul.msk.f32.vlgmr.msra.gmra.mxu3 %vm355_vm6, %v338_v26 }
 0x245   :  { %v322_v38 = vpop.f32.mrf.mxu2 }
 0x246   :  { %v929_v39 = vadd.f32 %v652_v37, %v322_v38 }
 0x248   :  { %v325_v33 = vmul.f32 0.5, %v929_v39 }
 0x24a   :  { %v326_v40 = vmul.f32 1.442695, %v325_v33 }
 0x2aa   :  { %v376_v29 = vpop.f32.mrf.mxu3 }
 0x2ab   :  { %v922_v30 = vadd.f32 %v651_v28, %v376_v29 }
 0x2ad   :  { %v379_v31 = vmul.f32 0.5, %v922_v30 }
 0x2af   :  { %v380_v32 = vmul.f32 1.442695, %v379_v31 }
 0x2b1   :  { %668 = vpow2.f32 %v380_v32 }
 0x2b2   :  { %670 = vpow2.f32 %v326_v40 }
 0x2b7   :  { %v669_v34 = vpop.eup %668 }
 0x2b8   :  { %v382_v36 = vmul.f32 %v669_v34, %v287_v27  ;;  %v671_v49 = vpop.eup %670 }
 0x2b9   :  { %v332_v52 = vmul.f32 %v671_v49, %v330_v50 }
 0x2ba   :  { %384 = vrot.lane.b32.xlu1 %v382_v36, %s687_s23 }
 0x32c   :  { %v385_v45 = vpop.permute.xlu1 %384 }
 0x32d   :  { %v387_v46 = vadd.f32 %v385_v45, %v922_v30 }
 0x32f   :  { %416 = vrot.lane.b32.xlu2 %v387_v46, %s688_s30 }
 0x337   :  { %334 = vrot.lane.b32.xlu2 %v332_v52, %s687_s23 }
 0x33f   :  { %464 = vrot.lane.b32.xlu2 %v613_v54, %s685_s4 }
 0x347   :  { %397 = vrot.lane.b32.xlu2 %v387_v46, %s685_s4 }
 0x389   :  { %v417_v59 = vpop.permute.xlu2 %416 }
 0x38a   :  { %419 = vst.msk [vmem:[#allocation3] sm:$0x3] %vm285_vm5, %v417_v59 }
 0x391   :  { %v335_v60 = vpop.permute.xlu2 %334  ;;  %v473_v35 = vld [vmem:[#allocation3] sm:$0x3] }
 0x392   :  { %v337_v61 = vadd.f32 %v335_v60, %v929_v39  ;;  %637 = vmatmul.msk.f32.vlgmr.msrb.gmra.mxu1 %vm355_vm6, %v473_v35 }
 0x394   :  { %389 = vrot.lane.b32.xlu2 %v337_v61, %s688_s30  ;;  %412 = vrot.lane.b32.xlu1 %v337_v61, %s685_s4 }
 0x399   :  { %v465_v19 = vpop.permute.xlu2 %464 }
 0x3a1   :  { %v398_v24 = vpop.permute.xlu2 %397 }
 0x3ee   :  { %v390_v28 = vpop.permute.xlu2 %389 }
 0x3ef   :  { %v400_v34 = vsel %vm301_vm4, %v929_v39, %v390_v28 }
 0x406   :  { %v413_v6 = vpop.permute.xlu1 %412 }
 0x407   :  { %415 = vst.msk [vmem:[#allocation2] sm:$0x3] %vm277_vm3, %v413_v6 }
 0x40e   :  { %v422_v8 = vld [vmem:[#allocation2] sm:$0x3] }
 0x40f   :  { %623 = vmatmul.msk.f32.vlgmr.msrb.gmra.mxu0 %vm301_vm4, %v422_v8  ;;  %v512_v9 = vpop.f32.mrf.mxu1 }
 0x410   :  { %v513_v10 = vadd.f32 %v653_v7, %v512_v9 }
 0x412   :  { %v515_v11 = vmul.f32 0.5, %v513_v10 }
 0x414   :  { %v516_v12 = vmul.f32 1.442695, %v515_v11 }
 0x416   :  { %672 = vpow2.f32 %v516_v12 }
 0x41c   :  { %v673_v13 = vpop.eup %672 }
 0x41d   :  { %v518_v14 = vmul.f32 %v673_v13, %v613_v54 }
 0x41f   :  { %520 = vrot.lane.b32.xlu0 %v518_v14, %s687_s23 }
 0x427   :  { %393 = vrot.lane.b32.xlu0 %v922_v30, %s687_s23 }
 0x48c   :  { %v457_v21 = vpop.f32.mrf.mxu0 }
 0x48d   :  { %v1028_v22 = vadd.f32 %v654_v20, %v457_v21 }
 0x48f   :  { %v460_v23 = vmul.f32 0.5, %v1028_v22 }
 0x491   :  { %v461_v25 = vmul.f32 1.442695, %v460_v23  ;;  %v521_v26 = vpop.permute.xlu0 %520 }
 0x492   :  { %v523_v27 = vadd.f32 %v521_v26, %v513_v10 }
 0x493   :  { %674 = vpow2.f32 %v461_v25 }
 0x494   :  { %533 = vrot.lane.b32.xlu0 %v523_v27, %s685_s4  ;;  %639 = vmatmul.msk.f32.vlgmr.msrb.gmra.mxu2 %vm97_vm2, %v523_v27 }
 0x499   :  { %v675_v29 = vpop.eup %674  ;;  %v394_v30 = vpop.permute.xlu0 %393 }
 0x49a   :  { %v402_v31 = vsel %vm97_vm2, %v394_v30, %v398_v24  ;;  %v467_v32 = vmul.f32 %v675_v29, %v465_v19  ;;  %v401_v38 = vsel %vm355_vm6, %v400_v34, %v394_v30 }
 0x49b   :  { %v405_v37 = vrot.slane %v402_v31, 6 }
 0x49c   :  { %469 = vrot.lane.b32.xlu1 %v467_v32, %s687_s23 }
 0x49d   :  { %v407_v33 = vsel %vm406_vm7, %v401_v38, %v405_v37 }
 0x49e   :  { %411 = vst.msk [vmem:[%s1086_s17] sm:$0xf] %vm1037_vm9, %v407_v33 }
 0x4a4   :  { %529 = vrot.lane.b32.xlu1 %v513_v10, %s687_s23 }
 0x506   :  { %v534_v62 = vpop.permute.xlu0 %533 }
 0x50e   :  { %v470_v39 = vpop.permute.xlu1 %469 }
 0x50f   :  { %v472_v40 = vadd.f32 %v470_v39, %v1028_v22 }
 0x511   :  { %525 = vrot.lane.b32.xlu1 %v472_v40, %s688_s30 }
 0x516   :  { %v530_v61 = vpop.permute.xlu1 %529 }
 0x517   :  { %v573_v42 = vpop.f32.mrf.mxu2  ;;  %v538_v0 = vsel %vm97_vm2, %v530_v61, %v534_v62 }
 0x518   :  { %v574_v43 = vadd.f32 %v655_v41, %v573_v42  ;;  %v541_v1 = vrot.slane %v538_v0, 6 }
 0x51a   :  { %v577_v44 = vand.u32 2147483647, %v574_v43  ;;  %v591_v50 = vmul.f32 1.442695, %v574_v43  ;;  %v576_v56 = vmax.f32 %v574_v43, 0.0 }
 0x51c   :  { %v578_v45 = vsub.f32 0.0, %v577_v44 }
 0x51e   :  { %v579_v46 = vmul.f32 1.442695, %v578_v45 }
 0x520   :  { %676 = vpow2.f32 %v579_v46 }
 0x526   :  { %v677_v47 = vpop.eup %676 }
 0x527   :  { %v581_v48 = vadd.f32 1.0, %v677_v47  ;;  %v584_v49 = vmul.f32 -0.5, %v677_v47  ;;  %v587_v52 = vand.u32 2147483647, %v677_v47 }
 0x529   :  { %678 = vlog2.f32 %v581_v48  ;;  %v585_v51 = vadd.f32 1.0, %v584_v49  ;;  %vm588_vm10 = vcmp.lt.f32.partialorder %v587_v52, 0.0004427343 }
 0x52a   :  { %680 = vpow2.f32 %v591_v50 }
 0x52b   :  { %v586_v55 = vmul.f32 %v677_v47, %v585_v51 }
 0x52f   :  { %v679_v53 = vpop.eup %678 }
 0x530   :  { %v583_v54 = vmul.f32 0.6931472, %v679_v53  ;;  %v681_v59 = vpop.eup %680 }
 0x532   :  { %v589_v57 = vsel %vm588_vm10, %v586_v55, %v583_v54 }
 0x533   :  { %v590_v58 = vadd.f32 %v589_v57, %v576_v56 }
 0x535   :  { %v594_v60 = vsel %vm593_vm11, %v574_v43, %v590_v58 }
 0x536   :  { %v595_v35 = vsel %vm97_vm2, %v594_v60, %v681_v59 }
 0x537   :  { %597 = vst.msk [vmem:[%s1087_s18] sm:$0x3] %vm596_vm12, %v595_v35 }
 0x583   :  { %v526_v63 = vpop.permute.xlu1 %525 }
 0x584   :  { %v536_v2 = vsel %vm301_vm4, %v1028_v22, %v526_v63 }
 0x585   :  { %v537_v3 = vsel %vm355_vm6, %v536_v2, %v530_v61 }
 0x586   :  { %v542_v4 = vsel %vm406_vm7, %v537_v3, %v541_v1 }
 0x587   :  { %638 = vst.msk [vmem:[%s1086_s17 + $0x4] sm:$0xf] %vm1037_vm9, %v542_v4 }

</bundles_post_ra>
